<compile_context>
chip_gen: v6e
topology: v6e:2x2x1
jax: 0.10.0
libtpu: 0.0.40
codegen_flags: <defaults>
</compile_context>

<pallas_src>
import functools

import jax
import jax.numpy as jnp
from jax.experimental import pallas as pl
from jax.experimental.pallas import tpu as pltpu

_EPS = 1e-5


def _ibn_kernel(x_ref, gin_ref, bin_ref, gbn_ref, bbn_ref, o_ref,
                sum_ref, sumsq_ref, *, half, c2, inv_hw, inv_count, eps):
    p = pl.program_id(0)    # 0 = accumulate BN stats, 1 = normalize + write
    blk = pl.program_id(1)  # batch-block index

    @pl.when(jnp.logical_and(p == 0, blk == 0))
    def _init():
        sum_ref[...] = jnp.zeros_like(sum_ref)
        sumsq_ref[...] = jnp.zeros_like(sumsq_ref)

    @pl.when(p == 0)
    def _accumulate():
        # Only the BN channels are needed in the stats pass.
        xb = x_ref[:, pl.ds(half, c2), :].astype(jnp.float32)   # (nb, C2, HW)
        s = jnp.sum(xb, axis=-1, keepdims=True)                 # lane reduce (XLU)
        ss = jnp.sum(xb * xb, axis=-1, keepdims=True)
        sum_ref[...] += jnp.sum(s, axis=0)                      # (C2, 1)
        sumsq_ref[...] += jnp.sum(ss, axis=0)                   # (C2, 1)

    @pl.when(p == 1)
    def _normalize():
        x = x_ref[...].astype(jnp.float32)                      # (nb, C, HW)

        # ---- InstanceNorm half: per-(n, c) stats over HW, single sweep ----
        xi = x[:, :half, :]                                     # (nb, C1, HW)
        s_i = jnp.sum(xi, axis=-1, keepdims=True)
        ss_i = jnp.sum(xi * xi, axis=-1, keepdims=True)
        mu_i = s_i * inv_hw
        var_i = jnp.maximum(ss_i * inv_hw - mu_i * mu_i, 0.0)
        scale_i = jax.lax.rsqrt(var_i + eps) * gin_ref[...]     # (nb, C1, 1)
        shift_i = bin_ref[...] - mu_i * scale_i
        o_ref[:, pl.ds(0, half), :] = (xi * scale_i + shift_i).astype(o_ref.dtype)

        # ---- BatchNorm half: batch stats from the pass-0 accumulators ----
        xb = x[:, half:, :]                                     # (nb, C2, HW)
        mu_b = (sum_ref[...] * inv_count)[None]                 # (1, C2, 1)
        var_b = jnp.maximum((sumsq_ref[...] * inv_count)[None] - mu_b * mu_b, 0.0)
        scale_b = jax.lax.rsqrt(var_b + eps) * gbn_ref[...]     # (1, C2, 1)
        shift_b = bbn_ref[...] - mu_b * scale_b
        o_ref[:, pl.ds(half, c2), :] = (xb * scale_b + shift_b).astype(o_ref.dtype)


def _pick_batch_block(n, bytes_per_batch, target_bytes=4 * 1024 * 1024):
    """Largest divisor of n whose block fits the ~4 MiB per-buffer target."""
    nb = 1
    for d in range(1, n + 1):
        if n % d == 0 and d * bytes_per_batch <= target_bytes:
            nb = d
    return nb


def ibn_a_forward(x, in_weight, in_bias, bn_weight, bn_bias, half):
    """IBN_a forward.  x: (N, C, H, W) (NCHW, as in PyTorch)."""
    N, C, H, W = x.shape
    C1 = int(half)
    C2 = C - C1
    assert 1 <= C1 < C, "IBN_a requires at least one IN and one BN channel"
    HW = H * W

    # Free, contiguous reshape: kernel works in (N, C, H*W) end-to-end.
    x3 = x.reshape(N, C, HW)

    # Per-channel affine params as small lane-broadcastable (1, C, 1) columns.
    gin = in_weight.reshape(1, C1, 1).astype(jnp.float32)
    bin_ = in_bias.reshape(1, C1, 1).astype(jnp.float32)
    gbn = bn_weight.reshape(1, C2, 1).astype(jnp.float32)
    bbn = bn_bias.reshape(1, C2, 1).astype(jnp.float32)

    nb = _pick_batch_block(N, C * HW * x.dtype.itemsize)
    grid = (2, N // nb)   # (pass, batch-block); pass axis is the slow axis.

    kernel = functools.partial(
        _ibn_kernel,
        half=C1, c2=C2,
        inv_hw=1.0 / HW,
        inv_count=1.0 / (N * HW),
        eps=_EPS,
    )

    def _param_spec(c):
        # Tiny, resident in VMEM for the whole grid (constant index_map).
        return pl.BlockSpec((1, c, 1), lambda p, i: (0, 0, 0))

    out3 = pl.pallas_call(
        kernel,
        out_shape=jax.ShapeDtypeStruct((N, C, HW), x.dtype),
        grid=grid,
        in_specs=[
            pl.BlockSpec((nb, C, HW), lambda p, i: (i, 0, 0)),   # x, read each pass
            _param_spec(C1),   # IN gamma
            _param_spec(C1),   # IN beta
            _param_spec(C2),   # BN gamma
            _param_spec(C2),   # BN beta
        ],
        # Pinned to block 0 during pass 0 (no garbage flush); advances with the
        # batch-block during pass 1, so each output block is written exactly once.
        out_specs=pl.BlockSpec((nb, C, HW), lambda p, i: (p * i, 0, 0)),
        scratch_shapes=[
            pltpu.VMEM((C2, 1), jnp.float32),   # per-channel sum
            pltpu.VMEM((C2, 1), jnp.float32),   # per-channel sum of squares
        ],
        compiler_params=pltpu.CompilerParams(
            dimension_semantics=("arbitrary", "arbitrary"),
            vmem_limit_bytes=40 * 1024 * 1024,   # safe on v5e/v6e/v7x (<=64 MiB phys)
        ),
    )(x3, gin, bin_, gbn, bbn)

    return out3.reshape(N, C, H, W)


if __name__ == "__main__":
    # Small shapes consistent with the module: batch=2, planes=4, spatial=16.
    N, planes, H, W = 2, 4, 16, 16
    half = planes // 2           # IN channels
    half2 = planes - half        # BN channels

    key = jax.random.PRNGKey(0)
    kx, kg1, kb1, kg2, kb2 = jax.random.split(key, 5)

    x = jax.random.normal(kx, (N, planes, H, W), dtype=jnp.float32)

    # Deterministic non-trivial affine parameters so both affine paths are exercised.
    in_weight = 1.0 + 0.1 * jax.random.normal(kg1, (half,), dtype=jnp.float32)
    in_bias = 0.1 * jax.random.normal(kb1, (half,), dtype=jnp.float32)
    bn_weight = 1.0 + 0.1 * jax.random.normal(kg2, (half2,), dtype=jnp.float32)
    bn_bias = 0.1 * jax.random.normal(kb2, (half2,), dtype=jnp.float32)

    out = ibn_a_forward(x, in_weight, in_bias, bn_weight, bn_bias, half)
    out = jax.block_until_ready(out)

    assert out.shape == (N, planes, H, W)
    assert out.dtype == x.dtype

    # Pure-JAX reference (training-mode BN, biased variances, eps=1e-5).
    x1, x2 = x[:, :half], x[:, half:]
    mu1 = x1.mean(axis=(2, 3), keepdims=True)
    v1 = ((x1 - mu1) ** 2).mean(axis=(2, 3), keepdims=True)
    ref1 = (x1 - mu1) * jax.lax.rsqrt(v1 + _EPS) * in_weight.reshape(1, -1, 1, 1) \
        + in_bias.reshape(1, -1, 1, 1)
    mu2 = x2.mean(axis=(0, 2, 3), keepdims=True)
    v2 = ((x2 - mu2) ** 2).mean(axis=(0, 2, 3), keepdims=True)
    ref2 = (x2 - mu2) * jax.lax.rsqrt(v2 + _EPS) * bn_weight.reshape(1, -1, 1, 1) \
        + bn_bias.reshape(1, -1, 1, 1)
    ref = jnp.concatenate([ref1, ref2], axis=1)
    max_err = float(jnp.max(jnp.abs(out - ref)))
    assert jnp.allclose(out, ref, atol=2e-4, rtol=2e-4), max_err

    print("KERNEL_OK")
</pallas_src>

<mosaic_0001>
module attributes {stable_mosaic.version = 11 : i64} {
  func.func @_ibn_kernel(%arg0: i32, %arg1: i32, %arg2: memref<2x4x256xf32, #tpu.memory_space<vmem>>, %arg3: memref<1x2x1xf32, #tpu.memory_space<vmem>>, %arg4: memref<1x2x1xf32, #tpu.memory_space<vmem>>, %arg5: memref<1x2x1xf32, #tpu.memory_space<vmem>>, %arg6: memref<1x2x1xf32, #tpu.memory_space<vmem>>, %arg7: memref<2x4x256xf32, #tpu.memory_space<vmem>>, %arg8: memref<2x1xf32, #tpu.memory_space<vmem>>, %arg9: memref<2x1xf32, #tpu.memory_space<vmem>>) attributes {dimension_semantics = [#tpu.dimension_semantics<arbitrary>, #tpu.dimension_semantics<arbitrary>], iteration_bounds = array<i64: 2, 1>, scalar_prefetch = 0 : i64, scratch_operands = 2 : i64, tpu.core_type = #tpu.core_type<tc>, window_params = [{transform_indices = @transform_0, window_bounds = array<i64: 2, 4, 256>}, {pipeline_mode = #tpu.pipeline_mode<synchronous>, transform_indices = @transform_1, window_bounds = array<i64: 1, 2, 1>}, {pipeline_mode = #tpu.pipeline_mode<synchronous>, transform_indices = @transform_2, window_bounds = array<i64: 1, 2, 1>}, {pipeline_mode = #tpu.pipeline_mode<synchronous>, transform_indices = @transform_3, window_bounds = array<i64: 1, 2, 1>}, {pipeline_mode = #tpu.pipeline_mode<synchronous>, transform_indices = @transform_4, window_bounds = array<i64: 1, 2, 1>}, {transform_indices = @transform_5, window_bounds = array<i64: 2, 4, 256>}]} {
    %c0_i32 = arith.constant 0 : i32
    %0 = arith.cmpi eq, %arg0, %c0_i32 : i32
    %c0_i32_0 = arith.constant 0 : i32
    %1 = arith.cmpi eq, %arg1, %c0_i32_0 : i32
    %2 = arith.andi %0, %1 : i1
    %3 = arith.extui %2 : i1 to i32
    %c0_i32_1 = arith.constant 0 : i32
    %4 = arith.cmpi ne, %3, %c0_i32_1 : i32
    scf.if %4 {
      %cst = arith.constant 0.000000e+00 : f32
      %11 = vector.broadcast %cst : f32 to vector<2x1xf32>
      %c0 = arith.constant 0 : index
      %c0_5 = arith.constant 0 : index
      %12 = vector.load %arg8[%c0, %c0_5] : memref<2x1xf32, #tpu.memory_space<vmem>>, vector<2x1xf32>
      tpu.vector_store %arg8[%c0, %c0_5], %11 {strides = array<i32>} : memref<2x1xf32, #tpu.memory_space<vmem>>, vector<2x1xf32>,
      %cst_6 = arith.constant 0.000000e+00 : f32
      %13 = vector.broadcast %cst_6 : f32 to vector<2x1xf32>
      %c0_7 = arith.constant 0 : index
      %c0_8 = arith.constant 0 : index
      %14 = vector.load %arg9[%c0_7, %c0_8] : memref<2x1xf32, #tpu.memory_space<vmem>>, vector<2x1xf32>
      tpu.vector_store %arg9[%c0_7, %c0_8], %13 {strides = array<i32>} : memref<2x1xf32, #tpu.memory_space<vmem>>, vector<2x1xf32>,
    } else {
    }
    %c0_i32_2 = arith.constant 0 : i32
    %5 = arith.cmpi eq, %arg0, %c0_i32_2 : i32
    %6 = arith.extui %5 : i1 to i32
    %c0_i32_3 = arith.constant 0 : i32
    %7 = arith.cmpi ne, %6, %c0_i32_3 : i32
    scf.if %7 {
      %c0 = arith.constant 0 : index
      %c2 = arith.constant 2 : index
      %c0_5 = arith.constant 0 : index
      %11 = vector.load %arg2[%c0, %c2, %c0_5] : memref<2x4x256xf32, #tpu.memory_space<vmem>>, vector<2x2x256xf32>
      %cst = arith.constant dense<0.000000e+00> : vector<2x2xf32>
      %12 = vector.multi_reduction <add>, %11, %cst [2] : vector<2x2x256xf32> to vector<2x2xf32>
      %13 = vector.shape_cast %12 : vector<2x2xf32> to vector<2x2x1xf32>
      %14 = arith.mulf %11, %11 : vector<2x2x256xf32>
      %cst_6 = arith.constant dense<0.000000e+00> : vector<2x2xf32>
      %15 = vector.multi_reduction <add>, %14, %cst_6 [2] : vector<2x2x256xf32> to vector<2x2xf32>
      %16 = vector.shape_cast %15 : vector<2x2xf32> to vector<2x2x1xf32>
      %c0_7 = arith.constant 0 : index
      %c0_8 = arith.constant 0 : index
      %17 = vector.load %arg8[%c0_7, %c0_8] : memref<2x1xf32, #tpu.memory_space<vmem>>, vector<2x1xf32>
      %cst_9 = arith.constant dense<0.000000e+00> : vector<2x1xf32>
      %18 = vector.multi_reduction <add>, %13, %cst_9 [0] : vector<2x2x1xf32> to vector<2x1xf32>
      %19 = arith.addf %17, %18 : vector<2x1xf32>
      %c0_10 = arith.constant 0 : index
      %c0_11 = arith.constant 0 : index
      %20 = vector.load %arg8[%c0_10, %c0_11] : memref<2x1xf32, #tpu.memory_space<vmem>>, vector<2x1xf32>
      tpu.vector_store %arg8[%c0_10, %c0_11], %19 {strides = array<i32>} : memref<2x1xf32, #tpu.memory_space<vmem>>, vector<2x1xf32>,
      %c0_12 = arith.constant 0 : index
      %c0_13 = arith.constant 0 : index
      %21 = vector.load %arg9[%c0_12, %c0_13] : memref<2x1xf32, #tpu.memory_space<vmem>>, vector<2x1xf32>
      %cst_14 = arith.constant dense<0.000000e+00> : vector<2x1xf32>
      %22 = vector.multi_reduction <add>, %16, %cst_14 [0] : vector<2x2x1xf32> to vector<2x1xf32>
      %23 = arith.addf %21, %22 : vector<2x1xf32>
      %c0_15 = arith.constant 0 : index
      %c0_16 = arith.constant 0 : index
      %24 = vector.load %arg9[%c0_15, %c0_16] : memref<2x1xf32, #tpu.memory_space<vmem>>, vector<2x1xf32>
      tpu.vector_store %arg9[%c0_15, %c0_16], %23 {strides = array<i32>} : memref<2x1xf32, #tpu.memory_space<vmem>>, vector<2x1xf32>,
    } else {
    }
    %c1_i32 = arith.constant 1 : i32
    %8 = arith.cmpi eq, %arg0, %c1_i32 : i32
    %9 = arith.extui %8 : i1 to i32
    %c0_i32_4 = arith.constant 0 : i32
    %10 = arith.cmpi ne, %9, %c0_i32_4 : i32
    scf.if %10 {
      %c0 = arith.constant 0 : index
      %c0_5 = arith.constant 0 : index
      %c0_6 = arith.constant 0 : index
      %11 = vector.load %arg2[%c0, %c0_5, %c0_6] : memref<2x4x256xf32, #tpu.memory_space<vmem>>, vector<2x4x256xf32>
      %12 = vector.extract_strided_slice %11 {offsets = [0, 0, 0], sizes = [2, 2, 256], strides = [1, 1, 1]} : vector<2x4x256xf32> to vector<2x2x256xf32>
      %cst = arith.constant dense<0.000000e+00> : vector<2x2xf32>
      %13 = vector.multi_reduction <add>, %12, %cst [2] : vector<2x2x256xf32> to vector<2x2xf32>
      %14 = vector.shape_cast %13 : vector<2x2xf32> to vector<2x2x1xf32>
      %15 = arith.mulf %12, %12 : vector<2x2x256xf32>
      %cst_7 = arith.constant dense<0.000000e+00> : vector<2x2xf32>
      %16 = vector.multi_reduction <add>, %15, %cst_7 [2] : vector<2x2x256xf32> to vector<2x2xf32>
      %17 = vector.shape_cast %16 : vector<2x2xf32> to vector<2x2x1xf32>
      %cst_8 = arith.constant 3.906250e-03 : f32
      %18 = vector.broadcast %cst_8 : f32 to vector<2x2x1xf32>
      %19 = arith.mulf %14, %18 : vector<2x2x1xf32>
      %cst_9 = arith.constant 3.906250e-03 : f32
      %20 = vector.broadcast %cst_9 : f32 to vector<2x2x1xf32>
      %21 = arith.mulf %17, %20 : vector<2x2x1xf32>
      %22 = arith.mulf %19, %19 : vector<2x2x1xf32>
      %23 = arith.subf %21, %22 : vector<2x2x1xf32>
      %cst_10 = arith.constant 0.000000e+00 : f32
      %24 = vector.broadcast %cst_10 : f32 to vector<2x2x1xf32>
      %25 = arith.maximumf %23, %24 : vector<2x2x1xf32>
      %cst_11 = arith.constant 9.99999974E-6 : f32
      %26 = vector.broadcast %cst_11 : f32 to vector<2x2x1xf32>
      %27 = arith.addf %25, %26 : vector<2x2x1xf32>
      %28 = math.rsqrt %27 : vector<2x2x1xf32>
      %c0_12 = arith.constant 0 : index
      %c0_13 = arith.constant 0 : index
      %c0_14 = arith.constant 0 : index
      %29 = vector.load %arg3[%c0_12, %c0_13, %c0_14] : memref<1x2x1xf32, #tpu.memory_space<vmem>>, vector<1x2x1xf32>
      %30 = vector.broadcast %29 : vector<1x2x1xf32> to vector<2x2x1xf32>
      %31 = arith.mulf %28, %30 : vector<2x2x1xf32>
      %c0_15 = arith.constant 0 : index
      %c0_16 = arith.constant 0 : index
      %c0_17 = arith.constant 0 : index
      %32 = vector.load %arg4[%c0_15, %c0_16, %c0_17] : memref<1x2x1xf32, #tpu.memory_space<vmem>>, vector<1x2x1xf32>
      %33 = arith.mulf %19, %31 : vector<2x2x1xf32>
      %34 = vector.broadcast %32 : vector<1x2x1xf32> to vector<2x2x1xf32>
      %35 = arith.subf %34, %33 : vector<2x2x1xf32>
      %36 = vector.broadcast %31 : vector<2x2x1xf32> to vector<2x2x256xf32>
      %37 = arith.mulf %12, %36 : vector<2x2x256xf32>
      %38 = vector.broadcast %35 : vector<2x2x1xf32> to vector<2x2x256xf32>
      %39 = arith.addf %37, %38 : vector<2x2x256xf32>
      %c0_18 = arith.constant 0 : index
      %c0_19 = arith.constant 0 : index
      %c0_20 = arith.constant 0 : index
      %40 = vector.load %arg7[%c0_18, %c0_19, %c0_20] : memref<2x4x256xf32, #tpu.memory_space<vmem>>, vector<2x2x256xf32>
      tpu.vector_store %arg7[%c0_18, %c0_19, %c0_20], %39 {strides = array<i32>} : memref<2x4x256xf32, #tpu.memory_space<vmem>>, vector<2x2x256xf32>,
      %41 = vector.extract_strided_slice %11 {offsets = [0, 2, 0], sizes = [2, 2, 256], strides = [1, 1, 1]} : vector<2x4x256xf32> to vector<2x2x256xf32>
      %c0_21 = arith.constant 0 : index
      %c0_22 = arith.constant 0 : index
      %42 = vector.load %arg8[%c0_21, %c0_22] : memref<2x1xf32, #tpu.memory_space<vmem>>, vector<2x1xf32>
      %cst_23 = arith.constant 0.001953125 : f32
      %43 = vector.broadcast %cst_23 : f32 to vector<2x1xf32>
      %44 = arith.mulf %42, %43 : vector<2x1xf32>
      %45 = vector.shape_cast %44 : vector<2x1xf32> to vector<1x2x1xf32>
      %c0_24 = arith.constant 0 : index
      %c0_25 = arith.constant 0 : index
      %46 = vector.load %arg9[%c0_24, %c0_25] : memref<2x1xf32, #tpu.memory_space<vmem>>, vector<2x1xf32>
      %cst_26 = arith.constant 0.001953125 : f32
      %47 = vector.broadcast %cst_26 : f32 to vector<2x1xf32>
      %48 = arith.mulf %46, %47 : vector<2x1xf32>
      %49 = vector.shape_cast %48 : vector<2x1xf32> to vector<1x2x1xf32>
      %50 = arith.mulf %45, %45 : vector<1x2x1xf32>
      %51 = arith.subf %49, %50 : vector<1x2x1xf32>
      %cst_27 = arith.constant 0.000000e+00 : f32
      %52 = vector.broadcast %cst_27 : f32 to vector<1x2x1xf32>
      %53 = arith.maximumf %51, %52 : vector<1x2x1xf32>
      %cst_28 = arith.constant 9.99999974E-6 : f32
      %54 = vector.broadcast %cst_28 : f32 to vector<1x2x1xf32>
      %55 = arith.addf %53, %54 : vector<1x2x1xf32>
      %56 = math.rsqrt %55 : vector<1x2x1xf32>
      %c0_29 = arith.constant 0 : index
      %c0_30 = arith.constant 0 : index
      %c0_31 = arith.constant 0 : index
      %57 = vector.load %arg5[%c0_29, %c0_30, %c0_31] : memref<1x2x1xf32, #tpu.memory_space<vmem>>, vector<1x2x1xf32>
      %58 = arith.mulf %56, %57 : vector<1x2x1xf32>
      %c0_32 = arith.constant 0 : index
      %c0_33 = arith.constant 0 : index
      %c0_34 = arith.constant 0 : index
      %59 = vector.load %arg6[%c0_32, %c0_33, %c0_34] : memref<1x2x1xf32, #tpu.memory_space<vmem>>, vector<1x2x1xf32>
      %60 = arith.mulf %45, %58 : vector<1x2x1xf32>
      %61 = arith.subf %59, %60 : vector<1x2x1xf32>
      %62 = vector.broadcast %58 : vector<1x2x1xf32> to vector<2x2x256xf32>
      %63 = arith.mulf %41, %62 : vector<2x2x256xf32>
      %64 = vector.broadcast %61 : vector<1x2x1xf32> to vector<2x2x256xf32>
      %65 = arith.addf %63, %64 : vector<2x2x256xf32>
      %c0_35 = arith.constant 0 : index
      %c2 = arith.constant 2 : index
      %c0_36 = arith.constant 0 : index
      %66 = vector.load %arg7[%c0_35, %c2, %c0_36] : memref<2x4x256xf32, #tpu.memory_space<vmem>>, vector<2x2x256xf32>
      tpu.vector_store %arg7[%c0_35, %c2, %c0_36], %65 {strides = array<i32>} : memref<2x4x256xf32, #tpu.memory_space<vmem>>, vector<2x2x256xf32>,
    } else {
    }
    return
  }
  func.func @transform_0(%arg0: i32, %arg1: i32) -> (i32, i32, i32) {
    %c0_i32 = arith.constant 0 : i32
    %c0_i32_0 = arith.constant 0 : i32
    %c0_i32_1 = arith.constant 0 : i32
    return %arg1, %c0_i32, %c0_i32_0 : i32, i32, i32
  }
  func.func @transform_1(%arg0: i32, %arg1: i32) -> (i32, i32, i32) {
    %c0_i32 = arith.constant 0 : i32
    %c0_i32_0 = arith.constant 0 : i32
    %c0_i32_1 = arith.constant 0 : i32
    %c0_i32_2 = arith.constant 0 : i32
    return %c0_i32, %c0_i32_0, %c0_i32_1 : i32, i32, i32
  }
  func.func @transform_2(%arg0: i32, %arg1: i32) -> (i32, i32, i32) {
    %c0_i32 = arith.constant 0 : i32
    %c0_i32_0 = arith.constant 0 : i32
    %c0_i32_1 = arith.constant 0 : i32
    %c0_i32_2 = arith.constant 0 : i32
    return %c0_i32, %c0_i32_0, %c0_i32_1 : i32, i32, i32
  }
  func.func @transform_3(%arg0: i32, %arg1: i32) -> (i32, i32, i32) {
    %c0_i32 = arith.constant 0 : i32
    %c0_i32_0 = arith.constant 0 : i32
    %c0_i32_1 = arith.constant 0 : i32
    %c0_i32_2 = arith.constant 0 : i32
    return %c0_i32, %c0_i32_0, %c0_i32_1 : i32, i32, i32
  }
  func.func @transform_4(%arg0: i32, %arg1: i32) -> (i32, i32, i32) {
    %c0_i32 = arith.constant 0 : i32
    %c0_i32_0 = arith.constant 0 : i32
    %c0_i32_1 = arith.constant 0 : i32
    %c0_i32_2 = arith.constant 0 : i32
    return %c0_i32, %c0_i32_0, %c0_i32_1 : i32, i32, i32
  }
  func.func @transform_5(%arg0: i32, %arg1: i32) -> (i32, i32, i32) {
    %0 = arith.muli %arg0, %arg1 : i32
    %c0_i32 = arith.constant 0 : i32
    %c0_i32_0 = arith.constant 0 : i32
    %c0_i32_1 = arith.constant 0 : i32
    return %0, %c0_i32, %c0_i32_0 : i32, i32, i32
  }
}

</mosaic_0001>

<bundles_post_ra>
// kernel: tpu_custom_call.1
= control target key start
LH: loop header
LB: loop body
LE: loop exit
PB: predicated region body
PF: predicated region fallthrough
CT: control target
= control target key end

     0   :  { %10 = vsyncpa [#allocation5], 0  ;;  %s887_s0 = inlined_call_operand.hbm [shape: f32[2,4,256], index: 0, kind: input, shape index: {}]   ;;  %s888_s1 = inlined_call_operand.vmem [shape: f32[1,2,1], index: 1, kind: input, shape index: {}]   ;;  %s889_s2 = inlined_call_operand.vmem [shape: f32[1,2,1], index: 2, kind: input, shape index: {}]   ;;  %s890_s3 = inlined_call_operand.vmem [shape: f32[1,2,1], index: 3, kind: input, shape index: {}]   ;;  %s891_s4 = inlined_call_operand.vmem [shape: f32[1,2,1], index: 4, kind: input, shape index: {}]   ;;  %s892_s5 = inlined_call_operand.hbm [shape: f32[2,4,256], index: 5, kind: output, shape index: {}]  }
   0x1   :  { %11 = vsyncpa [#allocation6], 0 }
   0x2   :  { %13 = vsyncpa [#allocation6 + $0x1], 0  ;;  %s764_s18 = smov 0   ;;  %s766_s19 = smov 0  }
   0x3   :  { %s768_s20 = smov 0  }
   0x4 LB: > { %s563_s21 = sadd.s32 4294967295, %s723_s20   ;;  %s564_s22 = sadd.s32 4294967294, %s723_s20   ;;  %s723_s20 = sphi %s768_s20, %s19_s20   ;;  %s719_s19 = sphi %s766_s19, %s897_s19   ;;  %s715_s18 = sphi %s764_s18, %s896_s18  }
   0x5   : > { %s31_s23 = sadd.s32 1, %s719_s19  ;;  %p565_p0 = scmp.ge.s32.totalorder %s723_s20, 1 }
   0x6   : > { %p33_p1 = scmp.ge.s32.totalorder %s31_s23, 2  ;;  %p174_p2 = scmp.lt.s32.totalorder %s723_s20, 3 }
   0x7   : > { %p786_p3 = scmp.eq.s32.totalorder %s563_s21, 0  ;;  %s725_s26 = smov [#allocation4]  }
   0x8   : > { %s899_s23 = smov (%p33_p1, %s31_s23), 0  ;;  %p792_p4 = pnand %p565_p0, %p174_p2 }
   0x9   : > { %s190_s27 = sshll.u32 %s725_s26, 4  ;;  %s191_s27 = int_to_ptr.vmem [resolvable:$true] %s190_s27 }
   0xa   : > { %p585_p5 = pneg %p792_p4  ;;  %s654_s28 = scalar_lea.vmem %s191_s27, 256 }
   0xb   : > { %p655_p8 = scmp.ne.s32.totalorder %s191_s27, %s654_s28  ;;  %p662_p11 = scmp.lt.s32.totalorder %s191_s27, %s191_s27 }
   0xc   : > { %p586_p6 = pnand %p786_p3, %p585_p5  ;;  %p663_p12 = scmp.lt.s32.totalorder %s654_s28, %s654_s28 }
   0xe   : > { %p645_p7 = pneg %p586_p6  ;;  %p664_p13 = por %p663_p12, %p662_p11 }
  0x10   : > { %p657_p9 = pnand %p655_p8, %p645_p7 }
  0x12   : > { %p658_p10 = pneg %p657_p9 }
  0x14   : > { %p665_p0 = pnand %p664_p13, %p658_p10 }
  0x16   : > { %668 = shalt.err (!%p665_p0)
}
  0x17   : > { %s726_s29 = smov 128   ;;  %s727_s30 = smov 8  }
  0x18   : > { %588 = dma.hbm_to_vmem [thread:$0]  (!%p586_p6), %s887_s0, 256, %s191_s27, [#allocation5], %s726_s29, %s726_s29, %s727_s30  }
  0x19   : > { %218 = sbr.rel (%p792_p4) target bundleno = 535 (0x217), region = 40 }
  0x1e   : > { %706 = dma.done.wait (%p786_p3), [#allocation5], 256  }
  0x1f   : > { %708 = vsyncadd (%p786_p3), [#allocation5], 4294967040  ;;  %p244_p1 = scmp.eq.s32.totalorder %s715_s18, 0 }
  0x20   : > { %vm250_vm0 = vcmask (%p244_p1), 1024   ;;  %v728_v0 = vmov (%p244_p1), 0.0  }
  0x21   : > { %249 = sbr.rel (!%p244_p1) target bundleno = 38 (0x26), region = 48  ;;  %251 = vst.msk [vmem:[#allocation2] sm:$0x3] (%p244_p1), %vm250_vm0, %v728_v0  ;;  %252 = vst.msk [vmem:[#allocation3] sm:$0x3] (%p244_p1), %vm250_vm0, %v728_v0 }
  0x26 PF: > { %p570_p2 = scmp.ne.s32.totalorder %s715_s18, 0 }
  0x28   : > { %255 = sbr.rel (%p570_p2) target bundleno = 203 (0xcb), region = 52 }
  0x2d   : > { %v256_v1 = vld [vmem:[#allocation4] sm:$0xcc]  ;;  %vm264_vm1 = vcmask 1043458   ;;  %v257_v2 = vld [vmem:[#allocation4 + $0x8] sm:$0xcc]  ;;  %vm301_vm2 = vcmask 1024  }
  0x2e   : > { %v260_v3 = vcombine.high %v256_v1, %v256_v1  ;;  %v265_v4 = vsel %vm264_vm1, %v256_v1, 0.0  ;;  %v275_v5 = vmul.f32 %v256_v1, %v256_v1  ;;  %v261_v6 = vcombine.high %v257_v2, %v257_v2  ;;  %v293_v29 = vld [vmem:[#allocation2] sm:$0x3]  ;;  %v303_v33 = vld [vmem:[#allocation3] sm:$0x3] }
  0x2f   : > { %v270_v7 = vsel %vm264_vm1, %v257_v2, 0.0  ;;  %v276_v8 = vmul.f32 %v257_v2, %v257_v2 }
  0x30   : > { %v266_v9 = vsel %vm264_vm1, %v260_v3, 0.0  ;;  %v279_v10 = vcombine.high %v275_v5, %v275_v5  ;;  %v283_v11 = vsel %vm264_vm1, %v275_v5, 0.0  ;;  %v271_v12 = vsel %vm264_vm1, %v261_v6, 0.0 }
  0x31   : > { %v267_v13 = vadd.f32 %v266_v9, %v265_v4  ;;  %v280_v14 = vcombine.high %v276_v8, %v276_v8  ;;  %v288_v16 = vsel %vm264_vm1, %v276_v8, 0.0  ;;  %v272_v18 = vadd.f32 %v271_v12, %v270_v7 }
  0x32   : > { %v284_v15 = vsel %vm264_vm1, %v279_v10, 0.0 }
  0x33   : > { %268 = vadd.xlane.f32.xlu0 %v267_v13  ;;  %v285_v17 = vadd.f32 %v284_v15, %v283_v11  ;;  %v289_v19 = vsel %vm264_vm1, %v280_v14, 0.0 }
  0x34   : > { %v290_v20 = vadd.f32 %v289_v19, %v288_v16 }
  0x35   : > { %286 = vadd.xlane.f32.xlu1 %v285_v17 }
  0x37   : > { %273 = vadd.xlane.f32.xlu0 %v272_v18 }
  0x39   : > { %291 = vadd.xlane.f32.xlu1 %v290_v20 }
  0xbc   : > { %v269_v21 = vpop.xlane.xlu0 %268 }
  0xbd   : > { %v294_v24 = vsel %vm264_vm1, %v269_v21, 0.0 }
  0xbe   : > { %v287_v22 = vpop.xlane.xlu1 %286 }
  0xbf   : > { %v304_v28 = vsel %vm264_vm1, %v287_v22, 0.0 }
  0xc0   : > { %v274_v23 = vpop.xlane.xlu0 %273 }
  0xc1   : > { %v295_v25 = vsel %vm264_vm1, %v274_v23, 0.0 }
  0xc2   : > { %v296_v26 = vadd.f32 %v295_v25, %v294_v24  ;;  %v292_v27 = vpop.xlane.xlu1 %291 }
  0xc3   : > { %v305_v30 = vsel %vm264_vm1, %v292_v27, 0.0 }
  0xc4   : > { %v298_v31 = vrot.slane %v296_v26, 2  ;;  %v306_v32 = vadd.f32 %v305_v30, %v304_v28 }
  0xc6   : > { %v300_v34 = vadd.f32 %v298_v31, %v293_v29  ;;  %v308_v35 = vrot.slane %v306_v32, 2 }
  0xc8   : > { %302 = vst.msk [vmem:[#allocation2] sm:$0x3] %vm301_vm2, %v300_v34  ;;  %v310_v36 = vadd.f32 %v308_v35, %v303_v33 }
  0xca   : > { %311 = vst.msk [vmem:[#allocation3] sm:$0x3] %vm301_vm2, %v310_v36 }
  0xcb PF: > { %p571_p3 = scmp.ne.s32.totalorder %s715_s18, 1 }
  0xcd   : > { %315 = sbr.rel (%p571_p3) target bundleno = 521 (0x209), region = 56 }
  0xd2   : > { %v824_v37 = vld [vmem:[#allocation4] sm:$0xff]  ;;  %vm324_vm3 = vcmask 1041408   ;;  %v826_v38 = vld [vmem:[#allocation4 + $0x8] sm:$0xff]  ;;  %v429_v56 = vld [vmem:[#allocation2] sm:$0x3]  ;;  %v729_v3 = vmov 0   ;;  %v386_v11 = vlaneseq }
  0xd3   : > { %v320_v39 = vcombine.high %v824_v37, %v824_v37  ;;  %v325_v40 = vsel %vm324_vm3, %v824_v37, 0.0  ;;  %v335_v41 = vmul.f32 %v824_v37, %v824_v37  ;;  %v321_v42 = vcombine.high %v826_v38, %v826_v38  ;;  %v431_v59 = vld [vmem:[#allocation3] sm:$0x3]  ;;  %v438_v1 = vld [vmem:[%s890_s3] sm:$0x3]  ;;  %633 = vset.pattern.permute.xlu0 %v729_v3  ;;  %634 = vset.pattern.permute.xlu1 %v729_v3 }
  0xd4   : > { %v330_v43 = vsel %vm324_vm3, %v826_v38, 0.0  ;;  %v336_v44 = vmul.f32 %v826_v38, %v826_v38  ;;  %v430_v58 = vmul.f32 0.001953125, %v429_v56  ;;  %v432_v60 = vmul.f32 0.001953125, %v431_v59  ;;  %v440_v5 = vld [vmem:[%s891_s4] sm:$0x3] }
  0xd5   : > { %v326_v45 = vsel %vm324_vm3, %v320_v39, 0.0  ;;  %v339_v46 = vcombine.high %v335_v41, %v335_v41  ;;  %v343_v47 = vsel %vm324_vm3, %v335_v41, 0.0  ;;  %v331_v48 = vsel %vm324_vm3, %v321_v42, 0.0 }
  0xd6   : > { %v327_v49 = vadd.f32 %v326_v45, %v325_v40  ;;  %v340_v50 = vcombine.high %v336_v44, %v336_v44  ;;  %v348_v52 = vsel %vm324_vm3, %v336_v44, 0.0  ;;  %v332_v54 = vadd.f32 %v331_v48, %v330_v43  ;;  %v367_v40 = vld [vmem:[%s888_s1] sm:$0x3] }
  0xd7   : > { %v344_v51 = vsel %vm324_vm3, %v339_v46, 0.0  ;;  %v433_v61 = vmul.f32 %v430_v58, %v430_v58  ;;  %v730_v14 = vmov 839922192   ;;  %v387_v20 = vshrl.u32 %v386_v11, 7  ;;  %v370_v48 = vld [vmem:[%s889_s2] sm:$0x3] }
  0xd8   : > { %328 = vadd.xlane.f32.xlu0 %v327_v49  ;;  %v345_v53 = vadd.f32 %v344_v51, %v343_v47  ;;  %v349_v55 = vsel %vm324_vm3, %v340_v50, 0.0  ;;  %v384_v15 = vunpack.c.l.s4 %v730_v14 }
  0xd9   : > { %v350_v57 = vadd.f32 %v349_v55, %v348_v52  ;;  %v434_v62 = vsub.f32 %v432_v60, %v433_v61 }
  0xda   : > { %346 = vadd.xlane.f32.xlu1 %v345_v53  ;;  %v385_v24 = vunpack.c.0.s8 %v384_v15 }
  0xdb   : > { %v435_v63 = vmax.f32 %v434_v62, 0.0 }
  0xdc   : > { %333 = vadd.xlane.f32.xlu0 %v332_v54  ;;  %v388_v28 = vsub.s32 %v385_v24, %v387_v20 }
  0xdd   : > { %v436_v0 = vadd.f32 1e-05, %v435_v63 }
  0xde   : > { %351 = vadd.xlane.f32.xlu1 %v350_v57 }
  0xdf   : > { %637 = vrsqrt.f32 %v436_v0 }
  0xec   : > { %v638_v2 = vpop.eup %637 }
  0xed   : > { %v439_v4 = vmul.f32 %v638_v2, %v438_v1 }
  0xef   : > { %v441_v6 = vmul.f32 %v439_v4, %v430_v58 }
  0xf1   : > { %v442_v7 = vsub.f32 %v440_v5, %v441_v6 }
  0xf2   : > { %445 = vperm.xlu0 %633, %v439_v4  }
  0xf3   : > { %460 = vperm.xlu1 %634, %v442_v7  }
 0x161   : > { %v329_v8 = vpop.xlane.xlu0 %328 }
 0x162   : > { %v353_v9 = vmul.f32 0.00390625, %v329_v8 }
 0x163   : > { %v347_v10 = vpop.xlane.xlu1 %346 }
 0x164   : > { %v357_v12 = vmul.f32 %v353_v9, %v353_v9  ;;  %v355_v13 = vmul.f32 0.00390625, %v347_v10 }
 0x165   : > { %v334_v16 = vpop.xlane.xlu0 %333 }
 0x166   : > { %v359_v17 = vsub.f32 %v355_v13, %v357_v12  ;;  %v354_v18 = vmul.f32 0.00390625, %v334_v16 }
 0x167   : > { %v352_v19 = vpop.xlane.xlu1 %351 }
 0x168   : > { %v361_v21 = vmax.f32 %v359_v17, 0.0  ;;  %v358_v22 = vmul.f32 %v354_v18, %v354_v18  ;;  %v356_v23 = vmul.f32 0.00390625, %v352_v19 }
 0x16a   : > { %v363_v25 = vadd.f32 1e-05, %v361_v21  ;;  %v360_v26 = vsub.f32 %v356_v23, %v358_v22 }
 0x16c   : > { %639 = vrsqrt.f32 %v363_v25  ;;  %v362_v27 = vmax.f32 %v360_v26, 0.0 }
 0x16d   : > { %v446_v30 = vpop.permute.xlu0 %445 }
 0x16e   : > { %v364_v29 = vadd.f32 1e-05, %v362_v27  ;;  %v453_v31 = vrot.slane %v446_v30, %v388_v28  ;;  %v461_v33 = vpop.permute.xlu1 %460 }
 0x16f   : > { %v468_v36 = vrot.slane %v461_v33, %v388_v28 }
 0x170   : > { %641 = vrsqrt.f32 %v364_v29  ;;  %v454_v32 = vrot.slane %v453_v31, 6 }
 0x171   : > { %v469_v39 = vrot.slane %v468_v36, 6 }
 0x172   : > { %v456_v34 = vmul.f32 %v454_v32, %v824_v37  ;;  %v457_v35 = vmul.f32 %v454_v32, %v826_v38 }
 0x174   : > { %v471_v41 = vadd.f32 %v469_v39, %v456_v34  ;;  %v472_v42 = vadd.f32 %v469_v39, %v457_v35 }
 0x176   : > { %473 = vst [vmem:[#allocation7] sm:$0xcc] %v471_v41  ;;  %474 = vst [vmem:[#allocation7 + $0x8] sm:$0xcc] %v472_v42 }
 0x179   : > { %v640_v43 = vpop.eup %639 }
 0x17a   : > { %v368_v44 = vmul.f32 %v640_v43, %v367_v40 }
 0x17c   : > { %377 = vperm.xlu1 %634, %v368_v44   ;;  %v371_v47 = vmul.f32 %v368_v44, %v353_v9 }
 0x17d   : > { %v642_v45 = vpop.eup %641 }
 0x17e   : > { %v369_v46 = vmul.f32 %v642_v45, %v367_v40  ;;  %v373_v49 = vsub.f32 %v370_v48, %v371_v47 }
 0x180   : > { %381 = vperm.xlu1 %634, %v369_v46   ;;  %v372_v50 = vmul.f32 %v369_v46, %v354_v18 }
 0x182   : > { %v374_v51 = vsub.f32 %v370_v48, %v372_v50 }
 0x184   : > { %403 = vperm.xlu1 %634, %v373_v49  }
 0x188   : > { %407 = vperm.xlu1 %634, %v374_v51  }
 0x1f7   : > { %v378_v52 = vpop.permute.xlu1 %377 }
 0x1f8   : > { %v389_v54 = vrot.slane %v378_v52, %v388_v28 }
 0x1fa   : > { %v399_v56 = vmul.f32 %v389_v54, %v824_v37 }
 0x1fb   : > { %v382_v53 = vpop.permute.xlu1 %381 }
 0x1fc   : > { %v396_v57 = vrot.slane %v382_v53, %v388_v28 }
 0x1fe   : > { %v400_v61 = vmul.f32 %v396_v57, %v826_v38 }
 0x1ff   : > { %v404_v55 = vpop.permute.xlu1 %403 }
 0x200   : > { %v415_v58 = vrot.slane %v404_v55, %v388_v28 }
 0x202   : > { %v425_v59 = vadd.f32 %v415_v58, %v399_v56 }
 0x203   : > { %v408_v60 = vpop.permute.xlu1 %407 }
 0x204   : > { %427 = vst [vmem:[#allocation7] sm:$0x33] %v425_v59  ;;  %v422_v62 = vrot.slane %v408_v60, %v388_v28 }
 0x206   : > { %v426_v63 = vadd.f32 %v422_v62, %v400_v61 }
 0x208   : > { %428 = vst [vmem:[#allocation7 + $0x8] sm:$0x33] %v426_v63 }
 0x209 PF: > { %p864_p4 = scmp.eq.s32.totalorder %s563_s21, 1  ;;  %s731_s17 = smov [#allocation7]  }
 0x20a   : > { %s491_s18 = sshll.u32 %s731_s17, 4  ;;  %s492_s18 = int_to_ptr.vmem [resolvable:$true] %s491_s18 }
 0x20b   : > { %s669_s24 = scalar_lea.vmem %s492_s18, 256  ;;  %s675_s25 = scalar_lea.vmem %s492_s18, 512 }
 0x20c   : > { %p670_p5 = scmp.ne.s32.totalorder %s492_s18, %s669_s24  ;;  %p676_p8 = scmp.lt.s32.totalorder %s492_s18, %s492_s18 }
 0x20d   : > { %p677_p9 = scmp.lt.s32.totalorder %s675_s25, %s669_s24 }
 0x20e   : > { %p671_p6 = pnand %p670_p5, %p864_p4 }
 0x20f   : > { %p678_p10 = por %p677_p9, %p676_p8 }
 0x210   : > { %p672_p7 = pneg %p671_p6 }
 0x212   : > { %p679_p11 = pnand %p678_p10, %p672_p7 }
 0x214   : > { %682 = shalt.err (!%p679_p11)
}
 0x215   : > { %s732_s26 = smov 128   ;;  %s733_s21 = smov 8  }
 0x216   : > { %582 = dma.vmem_to_hbm [thread:$0]  (%p864_p4), %s492_s18, 256, %s892_s5, [#allocation6], %s732_s26, %s732_s26, %s733_s21  }
 0x217 PF: > { %p596_p12 = scmp.ge.s32.totalorder %s723_s20, 2  ;;  %p597_p13 = scmp.eq.s32.totalorder %s564_s22, 1 }
 0x219   : > { %p590_p0 = pnand %p597_p13, %p596_p12 }
 0x21b   : > { %p591_p1 = pneg %p590_p0 }
 0x21d   : > { %710 = dma.done.wait (%p591_p1), [#allocation6], 256  }
 0x21e   : > { %712 = vsyncadd (%p591_p1), [#allocation6], 4294967040  ;;  %s19_s20 = sadd.s32 1, %s723_s20   ;;  %s896_s18 = smov %s719_s19 }
 0x21f   : > { %p16_p2 = scmp.ge.s32.totalorder %s19_s20, 4   ;;  %s897_s19 = smov %s899_s23 }
 0x221   :  { %18 = sbr.rel (!%p16_p2) target bundleno = 4 (0x4), region = 90 }
 0x226   :  { %512 = vsyncpa [#allocation5], 1 }
 0x227   :  { %514 = vsyncpa [#allocation5 + $0x1], 1 }
 0x228   :  { %515 = vsyncpa [#allocation6], 1 }
 0x229   :  { %517 = vsyncpa [#allocation6 + $0x1], 1 }

</bundles_post_ra>
